<compile_context>
chip_gen: v7x
topology: tpu7x:2x2x1
jax: 0.10.0
libtpu: 0.0.40
codegen_flags: <defaults>
</compile_context>

<pallas_src>
import functools

import jax
import jax.numpy as jnp
from jax.experimental import pallas as pl
from jax.experimental.pallas import tpu as pltpu

LANE = 128      # vreg lane width (last dim)
SUBLANE = 8     # vreg sublane count (second-to-last dim)

# Conservative whole-arrays-in-VMEM budget (v7x scoped default is 32 MiB;
# leave generous headroom for double-buffering / compiler scratch).
_VMEM_BUDGET_BYTES = 16 << 20


def _round_up(n, m):
    return ((n + m - 1) // m) * m


def _qhead_fused_kernel(*refs, num_blocks, negative_slope):
    """Fused forward: refs = (x, w0, b0, ..., w_{nb-1}, b_{nb-1}, wh, bh, out).

    Every operand is a full-array VMEM block.  The layer loop is a static
    Python loop (layer count/shapes are fixed at trace time), so the running
    activation lives entirely in vregs/VMEM.  Weights are bf16 (MXU-native);
    the accumulate and all elementwise math stay fp32 (safe on v5e's VPU).
    """
    x_ref = refs[0]
    o_ref = refs[-1]
    p = refs[1:-1]

    h = x_ref[...].astype(jnp.float32)
    for i in range(num_blocks):
        w = p[2 * i][...]                       # bf16 weight tile
        b = p[2 * i + 1][...]                   # fp32 bias row
        y = jnp.dot(h.astype(jnp.bfloat16), w,
                    preferred_element_type=jnp.float32) + b        # MXU + VPU
        h = jnp.maximum(y, negative_slope * y)                     # LeakyReLU, 1 VALU op

    wh = p[2 * num_blocks][...]                 # all heads fused (bf16)
    bh = p[2 * num_blocks + 1][...]
    out = jnp.dot(h.astype(jnp.bfloat16), wh,
                  preferred_element_type=jnp.float32) + bh
    o_ref[...] = out.astype(o_ref.dtype)        # lane-dense unmasked store


class QHeadPallas:
    """JAX/Pallas re-implementation of the PyTorch QHead module."""

    def __init__(self, hidden_channels, c_sizes, key, negative_slope=0.2):
        self.negative_slope = float(negative_slope)
        self.hidden_channels = list(hidden_channels)
        self.c_sizes = list(c_sizes)

        # Deterministic parameter init (PyTorch-Linear-like uniform bound).
        def init_linear(k, fan_in, fan_out):
            kw, kb = jax.random.split(k)
            bound = 1.0 / jnp.sqrt(jnp.float32(fan_in))
            w = jax.random.uniform(kw, (fan_in, fan_out), jnp.float32, -bound, bound)
            b = jax.random.uniform(kb, (1, fan_out), jnp.float32, -bound, bound)
            return w, b

        n_blocks = len(hidden_channels) - 1
        keys = jax.random.split(key, n_blocks + len(c_sizes))

        # Unpadded fp32 parameters (also used by the pure-JAX references).
        self.block_params = [
            init_linear(keys[i], hidden_channels[i], hidden_channels[i + 1])
            for i in range(n_blocks)
        ]
        self.head_params = [
            init_linear(keys[n_blocks + j], hidden_channels[-1], c)
            for j, c in enumerate(c_sizes)
        ]

        # ---- Padded, kernel-resident layout -----------------------------
        # Zero-pad EVERY feature dim (including the input dim) to a full
        # 128-lane tile: zero-padded columns produce exactly 0 through
        # bias+LeakyReLU, so padding is inert and every matmul / load / store
        # runs on full, unmasked vregs with a single clean K pass.
        self.in_pad = _round_up(hidden_channels[0], LANE)
        pads = [self.in_pad] + [_round_up(d, LANE) for d in hidden_channels[1:]]

        # Weights stored bf16 in HBM (MXU-native operands, half the weight
        # DMA); biases stay fp32 (tiny, keeps the bias add exact).
        self.padded_block_params = []
        for i, (w, b) in enumerate(self.block_params):
            wp = (jnp.zeros((pads[i], pads[i + 1]), jnp.float32)
                  .at[: w.shape[0], : w.shape[1]].set(w)).astype(jnp.bfloat16)
            bp = (jnp.zeros((1, pads[i + 1]), jnp.float32)
                  .at[:, : b.shape[1]].set(b))
            self.padded_block_params.append((wp, bp))

        # Concatenate all heads along the output dim -> one matmul, one
        # lane-dense output slab; split per-head in the wrapper.
        self.total_c = sum(self.c_sizes)
        self.out_pad = _round_up(self.total_c, LANE)
        wh = jnp.concatenate([w for w, _ in self.head_params], axis=1)
        bh = jnp.concatenate([b for _, b in self.head_params], axis=1)
        self.padded_head_w = (jnp.zeros((pads[-1], self.out_pad), jnp.float32)
                              .at[: wh.shape[0], : wh.shape[1]].set(wh)
                              ).astype(jnp.bfloat16)
        self.padded_head_b = (jnp.zeros((1, self.out_pad), jnp.float32)
                              .at[:, : bh.shape[1]].set(bh))
        self._num_blocks = n_blocks

        # Static VMEM footprint of the resident parameters (bytes).
        self._param_bytes = sum(
            int(w.size) * 2 + int(b.size) * 4 for w, b in self.padded_block_params
        ) + int(self.padded_head_w.size) * 2 + int(self.padded_head_b.size) * 4

    def __call__(self, feature):
        B, d_in = feature.shape
        b_pad = _round_up(B, SUBLANE)
        x = feature
        if (b_pad, self.in_pad) != (B, d_in):
            # Pad batch (sublanes) / input features; zero padding is inert.
            x = jnp.zeros((b_pad, self.in_pad), feature.dtype).at[:B, :d_in].set(feature)

        # VMEM budget guard: whole-arrays-in-VMEM only while it clearly fits
        # (v7x: 64 MiB physical / 32 MiB scoped default).
        act_bytes = b_pad * (self.in_pad + self.out_pad) * 4
        assert self._param_bytes + act_bytes < _VMEM_BUDGET_BYTES, (
            "QHeadPallas: padded params/activations exceed the gridless VMEM "
            "budget; switch to a BlockSpec-tiled variant.")
        # TODO(synk): if batch/hidden sizes scale up, add a batch grid axis
        # marked "parallel" (dual-TC on v7x) with constant weight index_maps
        # and tile the hidden/output dims instead of the gridless form.

        inputs = [x]
        for w, b in self.padded_block_params:
            inputs.extend((w, b))
        inputs.extend((self.padded_head_w, self.padded_head_b))

        kernel = functools.partial(
            _qhead_fused_kernel,
            num_blocks=self._num_blocks,
            negative_slope=self.negative_slope,
        )
        out = pl.pallas_call(
            kernel,
            out_shape=jax.ShapeDtypeStruct((b_pad, self.out_pad), jnp.float32),
            # Gridless single invocation: whole arrays resident in VMEM.
            in_specs=[pl.BlockSpec(memory_space=pltpu.MemorySpace.VMEM)
                      for _ in inputs],
            out_specs=pl.BlockSpec(memory_space=pltpu.MemorySpace.VMEM),
            compiler_params=pltpu.CompilerParams(
                vmem_limit_bytes=_VMEM_BUDGET_BYTES),
        )(*inputs)

        # Single slice of the valid region, then per-head views (layout
        # plumbing only; matches the PyTorch list-of-tensors return).
        slab = out[:B, : self.total_c]
        outputs = []
        off = 0
        for c in self.c_sizes:
            outputs.append(slab[:, off:off + c])
            off += c
        return outputs


def _reference_fp32(model, feature):
    # Pure-fp32 JAX reference on the unpadded parameters.
    x = feature
    for w, b in model.block_params:
        y = x @ w + b
        x = jnp.where(y >= 0, y, model.negative_slope * y)
    return [x @ w + b for w, b in model.head_params]


def _reference_bf16(model, feature):
    # Mirrors the kernel numerics: bf16 dot operands, fp32 accumulate,
    # fp32 bias add + LeakyReLU.
    def bdot(a, w):
        return jnp.dot(a.astype(jnp.bfloat16), w.astype(jnp.bfloat16),
                       preferred_element_type=jnp.float32)
    x = feature.astype(jnp.float32)
    for w, b in model.block_params:
        y = bdot(x, w) + b
        x = jnp.maximum(y, model.negative_slope * y)
    return [bdot(x, w) + b for w, b in model.head_params]


if __name__ == "__main__":
    key = jax.random.PRNGKey(0)
    k_param, k_in = jax.random.split(key)

    batch = 8
    hidden_channels = [32, 64, 32]
    c_sizes = [10, 4]

    model = QHeadPallas(hidden_channels, c_sizes, k_param)
    feature = jax.random.normal(k_in, (batch, hidden_channels[0]), jnp.float32)

    outputs = model(feature)
    outputs = [jax.block_until_ready(o) for o in outputs]

    refs_bf16 = _reference_bf16(model, feature)
    refs_fp32 = _reference_fp32(model, feature)
    for o, rb, rf, c in zip(outputs, refs_bf16, refs_fp32, c_sizes):
        assert o.shape == (batch, c), (o.shape, c)
        # Tight check vs the bf16-mirrored reference (same numerics path).
        assert jnp.allclose(o, rb, atol=1e-3, rtol=1e-3), \
            float(jnp.max(jnp.abs(o - rb)))
        # Loose sanity check vs the pure-fp32 reference (bf16 operand rounding).
        assert jnp.allclose(o, rf, atol=5e-2, rtol=5e-2), \
            float(jnp.max(jnp.abs(o - rf)))

    print("KERNEL_OK")
</pallas_src>

<mosaic_0001>
module attributes {stable_mosaic.version = 11 : i64} {
  func.func @_qhead_fused_kernel(%arg0: memref<8x128xf32, #tpu.memory_space<vmem>>, %arg1: memref<128x128xbf16, #tpu.memory_space<vmem>>, %arg2: memref<1x128xf32, #tpu.memory_space<vmem>>, %arg3: memref<128x128xbf16, #tpu.memory_space<vmem>>, %arg4: memref<1x128xf32, #tpu.memory_space<vmem>>, %arg5: memref<128x128xbf16, #tpu.memory_space<vmem>>, %arg6: memref<1x128xf32, #tpu.memory_space<vmem>>, %arg7: memref<8x128xf32, #tpu.memory_space<vmem>>) attributes {dimension_semantics = [], scalar_prefetch = 0 : i64, scratch_operands = 0 : i64, tpu.core_type = #tpu.core_type<tc>} {
    %c0 = arith.constant 0 : index
    %c0_0 = arith.constant 0 : index
    %0 = vector.load %arg0[%c0, %c0_0] : memref<8x128xf32, #tpu.memory_space<vmem>>, vector<8x128xf32>
    %c0_1 = arith.constant 0 : index
    %c0_2 = arith.constant 0 : index
    %1 = vector.load %arg1[%c0_1, %c0_2] : memref<128x128xbf16, #tpu.memory_space<vmem>>, vector<128x128xbf16>
    %c0_3 = arith.constant 0 : index
    %c0_4 = arith.constant 0 : index
    %2 = vector.load %arg2[%c0_3, %c0_4] : memref<1x128xf32, #tpu.memory_space<vmem>>, vector<1x128xf32>
    %3 = arith.truncf %0 : vector<8x128xf32> to vector<8x128xbf16>
    %cst = arith.constant dense<0.000000e+00> : vector<8x128xf32>
    %4 = tpu.matmul %3, %1, %cst {dimension_numbers = #tpu.dot_dimension_numbers<[1], [0], [0], [1], [0, 0, 1, 1], [], []>} : vector<8x128xbf16>, vector<128x128xbf16>, vector<8x128xf32> -> vector<8x128xf32>
    %5 = vector.broadcast %2 : vector<1x128xf32> to vector<8x128xf32>
    %6 = arith.addf %4, %5 : vector<8x128xf32>
    %cst_5 = arith.constant 2.000000e-01 : f32
    %7 = vector.broadcast %cst_5 : f32 to vector<8x128xf32>
    %8 = arith.mulf %7, %6 : vector<8x128xf32>
    %9 = arith.maximumf %6, %8 : vector<8x128xf32>
    %c0_6 = arith.constant 0 : index
    %c0_7 = arith.constant 0 : index
    %10 = vector.load %arg3[%c0_6, %c0_7] : memref<128x128xbf16, #tpu.memory_space<vmem>>, vector<128x128xbf16>
    %c0_8 = arith.constant 0 : index
    %c0_9 = arith.constant 0 : index
    %11 = vector.load %arg4[%c0_8, %c0_9] : memref<1x128xf32, #tpu.memory_space<vmem>>, vector<1x128xf32>
    %12 = arith.truncf %9 : vector<8x128xf32> to vector<8x128xbf16>
    %cst_10 = arith.constant dense<0.000000e+00> : vector<8x128xf32>
    %13 = tpu.matmul %12, %10, %cst_10 {dimension_numbers = #tpu.dot_dimension_numbers<[1], [0], [0], [1], [0, 0, 1, 1], [], []>} : vector<8x128xbf16>, vector<128x128xbf16>, vector<8x128xf32> -> vector<8x128xf32>
    %14 = vector.broadcast %11 : vector<1x128xf32> to vector<8x128xf32>
    %15 = arith.addf %13, %14 : vector<8x128xf32>
    %cst_11 = arith.constant 2.000000e-01 : f32
    %16 = vector.broadcast %cst_11 : f32 to vector<8x128xf32>
    %17 = arith.mulf %16, %15 : vector<8x128xf32>
    %18 = arith.maximumf %15, %17 : vector<8x128xf32>
    %c0_12 = arith.constant 0 : index
    %c0_13 = arith.constant 0 : index
    %19 = vector.load %arg5[%c0_12, %c0_13] : memref<128x128xbf16, #tpu.memory_space<vmem>>, vector<128x128xbf16>
    %c0_14 = arith.constant 0 : index
    %c0_15 = arith.constant 0 : index
    %20 = vector.load %arg6[%c0_14, %c0_15] : memref<1x128xf32, #tpu.memory_space<vmem>>, vector<1x128xf32>
    %21 = arith.truncf %18 : vector<8x128xf32> to vector<8x128xbf16>
    %cst_16 = arith.constant dense<0.000000e+00> : vector<8x128xf32>
    %22 = tpu.matmul %21, %19, %cst_16 {dimension_numbers = #tpu.dot_dimension_numbers<[1], [0], [0], [1], [0, 0, 1, 1], [], []>} : vector<8x128xbf16>, vector<128x128xbf16>, vector<8x128xf32> -> vector<8x128xf32>
    %23 = vector.broadcast %20 : vector<1x128xf32> to vector<8x128xf32>
    %24 = arith.addf %22, %23 : vector<8x128xf32>
    %c0_17 = arith.constant 0 : index
    %c0_18 = arith.constant 0 : index
    %25 = vector.load %arg7[%c0_17, %c0_18] : memref<8x128xf32, #tpu.memory_space<vmem>>, vector<8x128xf32>
    tpu.vector_store %arg7[%c0_17, %c0_18], %24 {strides = array<i32>} : memref<8x128xf32, #tpu.memory_space<vmem>>, vector<8x128xf32>,
    return
  }
}

</mosaic_0001>

<bundles_post_ra>
// kernel: tpu_custom_call.1
= control target key start
LH: loop header
LB: loop body
LE: loop exit
PB: predicated region body
PF: predicated region fallthrough
CT: control target
= control target key end

     0   :  { %12 = vsyncpa [#allocation3], 0  ;;  %s862_s0 = inlined_call_operand.hbm [shape: f32[8,128], index: 0, kind: input, shape index: {}]   ;;  %s863_s1 = inlined_call_operand.hbm [shape: bf16[128,128], index: 1, kind: input, shape index: {}]   ;;  %s864_s2 = inlined_call_operand.vmem [shape: f32[1,128], index: 2, kind: input, shape index: {}]   ;;  %s865_s3 = inlined_call_operand.hbm [shape: bf16[128,128], index: 3, kind: input, shape index: {}]   ;;  %s866_s4 = inlined_call_operand.vmem [shape: f32[1,128], index: 4, kind: input, shape index: {}]   ;;  %s867_s5 = inlined_call_operand.hbm [shape: bf16[128,128], index: 5, kind: input, shape index: {}]   ;;  %s868_s6 = inlined_call_operand.vmem [shape: f32[1,128], index: 6, kind: input, shape index: {}]   ;;  %s869_s7 = inlined_call_operand.hbm [shape: f32[8,128], index: 7, kind: output, shape index: {}]  }
   0x1   :  { %13 = vsyncpa [#allocation6], 0 }
   0x2   :  { %14 = vsyncpa [#allocation9], 0 }
   0x3   :  { %15 = vsyncpa [#allocation4], 0  ;;  %s705_s24 = smov [#allocation5]   ;;  %s587_s28 = scalar_lea.hbm %s863_s1, 1024 }
   0x4   :  { %s31_s25 = sshll.u32 %s705_s24, 4  ;;  %p588_p0 = scmp.ne.s32.totalorder %s863_s1, %s587_s28  ;;  %s32_s25 = int_to_ptr.vmem [resolvable:$true] %s31_s25 }
   0x5   :  { %p591_p1 = scmp.lt.u32.totalorder %s587_s28, %s863_s1 }
   0x7   :  { %p593_p2 = pnand %p591_p1, %p588_p0 }
   0x9   :  { %596 = shalt.err (!%p593_p2)
}
   0xa   :  { %s597_s10 = scalar_lea.vmem %s32_s25, 1024  ;;  %p602_p4 = scmp.lt.s32.totalorder %s32_s25, %s32_s25 }
   0xb   :  { %p598_p3 = scmp.ne.s32.totalorder %s32_s25, %s597_s10  ;;  %p603_p5 = scmp.lt.s32.totalorder %s597_s10, %s597_s10 }
   0xd   :  { %p604_p6 = por %p603_p5, %p602_p4 }
   0xf   :  { %p605_p7 = pnand %p604_p6, %p598_p3 }
  0x11   :  { %608 = shalt.err (!%p605_p7)
}
  0x12   :  { %s706_s11 = smov 64   ;;  %s707_s12 = smov 4  }
  0x13   :  { %37 = dma.hbm_to_vmem [thread:$0]  %s863_s1, 1024, %s32_s25, [#allocation6], %s706_s11, %s706_s11, %s707_s12  }
  0x14   :  { %s708_s15 = smov [#allocation2]   ;;  %s709_s17 = smov [#allocation7]  }
  0x15   :  { %s22_s16 = sshll.u32 %s708_s15, 4  ;;  %s45_s18 = sshll.u32 %s709_s17, 4  ;;  %s23_s16 = int_to_ptr.vmem [resolvable:$true] %s22_s16  ;;  %s46_s18 = int_to_ptr.vmem [resolvable:$true] %s45_s18 }
  0x16   :  { %s609_s21 = scalar_lea.hbm %s862_s0, 128 }
  0x17   :  { %p610_p8 = scmp.ne.s32.totalorder %s862_s0, %s609_s21  ;;  %p613_p9 = scmp.lt.u32.totalorder %s609_s21, %s862_s0 }
  0x19   :  { %p615_p10 = pnand %p613_p9, %p610_p8 }
  0x1b   :  { %618 = shalt.err (!%p615_p10)
}
  0x1c   :  { %s619_s1 = scalar_lea.vmem %s23_s16, 128  ;;  %p624_p12 = scmp.lt.s32.totalorder %s23_s16, %s23_s16 }
  0x1d   :  { %p620_p11 = scmp.ne.s32.totalorder %s23_s16, %s619_s1  ;;  %p625_p13 = scmp.lt.s32.totalorder %s619_s1, %s619_s1 }
  0x1f   :  { %p626_p0 = por %p625_p13, %p624_p12 }
  0x21   :  { %p627_p1 = pnand %p626_p0, %p620_p11 }
  0x23   :  { %630 = shalt.err (!%p627_p1)
}
  0x24   :  { %25 = dma.hbm_to_vmem [thread:$0]  %s862_s0, 128, %s23_s16, [#allocation3]  }
  0x25   :  { %s631_s30 = scalar_lea.hbm %s865_s3, 1024 }
  0x26   :  { %p632_p2 = scmp.ne.s32.totalorder %s865_s3, %s631_s30  ;;  %p635_p3 = scmp.lt.u32.totalorder %s631_s30, %s865_s3 }
  0x28   :  { %p637_p4 = pnand %p635_p3, %p632_p2 }
  0x2a   :  { %640 = shalt.err (!%p637_p4)
}
  0x2b   :  { %s641_s14 = scalar_lea.vmem %s46_s18, 1024  ;;  %p646_p6 = scmp.lt.s32.totalorder %s46_s18, %s46_s18 }
  0x2c   :  { %p642_p5 = scmp.ne.s32.totalorder %s46_s18, %s641_s14  ;;  %p647_p7 = scmp.lt.s32.totalorder %s641_s14, %s641_s14 }
  0x2e   :  { %p648_p8 = por %p647_p7, %p646_p6 }
  0x30   :  { %p649_p9 = pnand %p648_p8, %p642_p5 }
  0x32   :  { %652 = shalt.err (!%p649_p9)
}
  0x33   :  { %51 = dma.hbm_to_vmem [thread:$0]  %s865_s3, 1024, %s46_s18, [#allocation6], %s706_s11, %s706_s11, %s707_s12  }
  0x34   :  { %s710_s16 = smov [#allocation8]   ;;  %s653_s21 = scalar_lea.hbm %s867_s5, 1024 }
  0x35   :  { %s59_s17 = sshll.u32 %s710_s16, 4  ;;  %p654_p10 = scmp.ne.s32.totalorder %s867_s5, %s653_s21  ;;  %s60_s17 = int_to_ptr.vmem [resolvable:$true] %s59_s17 }
  0x36   :  { %p657_p11 = scmp.lt.u32.totalorder %s653_s21, %s867_s5 }
  0x38   :  { %p659_p12 = pnand %p657_p11, %p654_p10 }
  0x3a   :  { %662 = shalt.err (!%p659_p12)
}
  0x3b   :  { %s663_s1 = scalar_lea.vmem %s60_s17, 1024  ;;  %p668_p0 = scmp.lt.s32.totalorder %s60_s17, %s60_s17 }
  0x3c   :  { %p664_p13 = scmp.ne.s32.totalorder %s60_s17, %s663_s1  ;;  %p669_p1 = scmp.lt.s32.totalorder %s663_s1, %s663_s1 }
  0x3e   :  { %p670_p2 = por %p669_p1, %p668_p0 }
  0x40   :  { %p671_p3 = pnand %p670_p2, %p664_p13 }
  0x42   :  { %674 = shalt.err (!%p671_p3)
}
  0x43   :  { %65 = dma.hbm_to_vmem [thread:$0]  %s867_s5, 1024, %s60_s17, [#allocation9], %s706_s11, %s706_s11, %s707_s12  }
  0x44   :  { %697 = dma.done.wait [#allocation3], 128  }
  0x45   :  { %698 = vsyncadd [#allocation3], 4294967168 }
  0x46   :  { %699 = dma.done.wait [#allocation6], 2048  }
  0x47   :  { %700 = vsyncadd [#allocation6], 4294965248 }
  0x48   :  { %701 = dma.done.wait [#allocation9], 1024  }
  0x49   :  { %702 = vsyncadd [#allocation9], 4294966272  ;;  %v711_v0 = vmov 0.0   ;;  %vm712_vm0 = vmmov 0   ;;  %v563_v1 = vld [vmem:[#allocation5] sm:$0xff]   ;;  %v564_v2 = vld [vmem:[#allocation5 + $0x8] sm:$0xff]  }
  0x4a   :  { %494 = vmatprep.subr.bf16.mxu0 %v711_v0  ;;  %510 = vmatprep.mubr.msk.bf16.mxu0 %vm712_vm0, %v711_v0  ;;  %v565_v3 = vld [vmem:[#allocation5 + $0x10] sm:$0xff]   ;;  %v571_v4 = vld [vmem:[#allocation7] sm:$0xff]   ;;  %v566_v5 = vld [vmem:[#allocation5 + $0x18] sm:$0xff]   ;;  %s713_s28 = smov [#allocation10]  }
  0x4b   :  { %514 = vmatprep.subr.bf16.mxu1 %v711_v0  ;;  %530 = vmatprep.mubr.msk.bf16.mxu1 %vm712_vm0, %v711_v0  ;;  %v572_v6 = vld [vmem:[#allocation7 + $0x8] sm:$0xff]   ;;  %v567_v7 = vld [vmem:[#allocation5 + $0x20] sm:$0xff]   ;;  %v573_v8 = vld [vmem:[#allocation7 + $0x10] sm:$0xff]   ;;  %s429_s29 = sshll.u32 %s713_s28, 4  ;;  %s430_s29 = int_to_ptr.vmem [resolvable:$true] %s429_s29 }
  0x4c   :  { %495 = vmatpush3.bf16.msra.mxu0 %v563_v1  ;;  %515 = vmatpush3.bf16.msra.mxu1 %v571_v4  ;;  %v568_v9 = vld [vmem:[#allocation5 + $0x28] sm:$0xff]   ;;  %v574_v10 = vld [vmem:[#allocation7 + $0x18] sm:$0xff]   ;;  %v569_v11 = vld [vmem:[#allocation5 + $0x30] sm:$0xff]   ;;  %p680_p5 = scmp.lt.s32.totalorder %s430_s29, %s430_s29 }
  0x4d   :  { %496 = vmatprep.subr.bf16.mxu0 %v711_v0  ;;  %516 = vmatprep.subr.bf16.mxu1 %v711_v0  ;;  %v575_v12 = vld [vmem:[#allocation7 + $0x20] sm:$0xff]   ;;  %v570_v13 = vld [vmem:[#allocation5 + $0x38] sm:$0xff]   ;;  %v576_v15 = vld [vmem:[#allocation7 + $0x28] sm:$0xff]  }
  0x4e   :  { %v81_v14 = vld [vmem:[#allocation2] sm:$0xff]  ;;  %v577_v17 = vld [vmem:[#allocation7 + $0x30] sm:$0xff]   ;;  %v579_v19 = vld [vmem:[#allocation8] sm:$0xff]  }
  0x4f   :  { %v99_v16 = vpack.c.bf16 %v81_v14, %v81_v14  ;;  %v578_v18 = vld [vmem:[#allocation7 + $0x38] sm:$0xff]   ;;  %v580_v20 = vld [vmem:[#allocation8 + $0x8] sm:$0xff]   ;;  %v581_v21 = vld [vmem:[#allocation8 + $0x10] sm:$0xff]  }
  0x50   :  { %497 = vmatpush3.bf16.msra.mxu0 %v564_v2  ;;  %517 = vmatpush3.bf16.msra.mxu1 %v572_v6  ;;  %v582_v22 = vld [vmem:[#allocation8 + $0x18] sm:$0xff]   ;;  %v583_v23 = vld [vmem:[#allocation8 + $0x20] sm:$0xff]   ;;  %v584_v24 = vld [vmem:[#allocation8 + $0x28] sm:$0xff]  }
  0x51   :  { %498 = vmatprep.subr.bf16.mxu0 %v711_v0  ;;  %518 = vmatprep.subr.bf16.mxu1 %v711_v0  ;;  %v440_v25 = vld [vmem:[%s864_s2] ss:$0 sm:$0xff]  ;;  %v585_v34 = vld [vmem:[#allocation8 + $0x30] sm:$0xff]  }
  0x52   :  { %v586_v35 = vld [vmem:[#allocation8 + $0x38] sm:$0xff]  }
  0x53   :  { %v449_v36 = vld [vmem:[%s866_s4] ss:$0 sm:$0xff]  ;;  %s675_s4 = scalar_lea.vmem %s430_s29, 128 }
  0x54   :  { %499 = vmatpush3.bf16.msra.mxu0 %v565_v3  ;;  %519 = vmatpush3.bf16.msra.mxu1 %v573_v8  ;;  %v458_v45 = vld [vmem:[%s868_s6] ss:$0 sm:$0xff]  ;;  %p676_p4 = scmp.ne.s32.totalorder %s430_s29, %s675_s4  ;;  %p681_p6 = scmp.lt.s32.totalorder %s675_s4, %s675_s4 }
  0x55   :  { %500 = vmatprep.subr.bf16.mxu0 %v711_v0  ;;  %520 = vmatprep.subr.bf16.mxu1 %v711_v0 }
  0x56   :  { %p682_p7 = por %p681_p6, %p680_p5 }
  0x58   :  { %501 = vmatpush3.bf16.msra.mxu0 %v566_v5  ;;  %521 = vmatpush3.bf16.msra.mxu1 %v574_v10  ;;  %p683_p8 = pnand %p682_p7, %p676_p4 }
  0x59   :  { %502 = vmatprep.subr.bf16.mxu0 %v711_v0  ;;  %522 = vmatprep.subr.bf16.mxu1 %v711_v0 }
  0x5c   :  { %503 = vmatpush3.bf16.msra.mxu0 %v567_v7  ;;  %523 = vmatpush3.bf16.msra.mxu1 %v575_v12 }
  0x5d   :  { %504 = vmatprep.subr.bf16.mxu0 %v711_v0  ;;  %524 = vmatprep.subr.bf16.mxu1 %v711_v0 }
  0x60   :  { %505 = vmatpush3.bf16.msra.mxu0 %v568_v9  ;;  %525 = vmatpush3.bf16.msra.mxu1 %v576_v15 }
  0x61   :  { %506 = vmatprep.subr.bf16.mxu0 %v711_v0  ;;  %526 = vmatprep.subr.bf16.mxu1 %v711_v0 }
  0x64   :  { %507 = vmatpush3.bf16.msra.mxu0 %v569_v11  ;;  %527 = vmatpush3.bf16.msra.mxu1 %v577_v17 }
  0x65   :  { %508 = vmatprep.subr.bf16.mxu0 %v711_v0  ;;  %528 = vmatprep.subr.bf16.mxu1 %v711_v0 }
  0x68   :  { %509 = vmatpush3.bf16.msra.mxu0 %v570_v13  ;;  %529 = vmatpush3.bf16.msra.mxu1 %v578_v18 }
  0x69   :  { %534 = vmatprep.subr.bf16.mxu0 %v711_v0 }
  0x6b   :  { %511 = vmatmul.mubr.bf16.vlgmr.msra.gmra.mrb[0].mxu0 %v99_v16 }
  0x6c   :  { %550 = vmatprep.mubr.msk.bf16.mxu0 %vm712_vm0, %v711_v0  ;;  %535 = vmatpush3.bf16.msra.mxu0 %v579_v19 }
  0x6d   :  { %536 = vmatprep.subr.bf16.mxu0 %v711_v0 }
  0x70   :  { %537 = vmatpush3.bf16.msra.mxu0 %v580_v20 }
  0x71   :  { %538 = vmatprep.subr.bf16.mxu0 %v711_v0 }
  0x74   :  { %539 = vmatpush3.bf16.msra.mxu0 %v581_v21 }
  0x75   :  { %540 = vmatprep.subr.bf16.mxu0 %v711_v0 }
  0x78   :  { %541 = vmatpush3.bf16.msra.mxu0 %v582_v22 }
  0x79   :  { %542 = vmatprep.subr.bf16.mxu0 %v711_v0 }
  0x7c   :  { %543 = vmatpush3.bf16.msra.mxu0 %v583_v23 }
  0x7d   :  { %544 = vmatprep.subr.bf16.mxu0 %v711_v0 }
  0x80   :  { %545 = vmatpush3.bf16.msra.mxu0 %v584_v24 }
  0x81   :  { %546 = vmatprep.subr.bf16.mxu0 %v711_v0 }
  0x84   :  { %547 = vmatpush3.bf16.msra.mxu0 %v585_v34 }
  0x85   :  { %548 = vmatprep.subr.bf16.mxu0 %v711_v0 }
  0x88   :  { %549 = vmatpush3.bf16.msra.mxu0 %v586_v35 }
 0x13e   :  { %v188_v26 = vpop.f32.mrb[0].mxu0 }
 0x13f   :  { %v189_v27 = vadd.f32 %v440_v25, %v188_v26  ;;  %v512_v28 = vpop.f32.mrb[1].mxu0 }
 0x140   :  { %v191_v29 = vpop.f32.mrb[2].mxu0 }
 0x141   :  { %v194_v30 = vmul.f32 0.2, %v189_v27  ;;  %v513_v31 = vpop.f32.mrb[3].mxu0 }
 0x143   :  { %v195_v32 = vmax.f32 %v189_v27, %v194_v30 }
 0x145   :  { %v213_v33 = vpack.c.bf16 %v195_v32, %v195_v32 }
 0x147   :  { %531 = vmatmul.mubr.bf16.vlgmr.msra.gmra.mrb[0].mxu1 %v213_v33 }
 0x21a   :  { %v302_v37 = vpop.f32.mrb[0].mxu1 }
 0x21b   :  { %v303_v38 = vadd.f32 %v449_v36, %v302_v37  ;;  %v532_v39 = vpop.f32.mrb[1].mxu1 }
 0x21c   :  { %v305_v40 = vpop.f32.mrb[2].mxu1 }
 0x21d   :  { %v308_v41 = vmul.f32 0.2, %v303_v38  ;;  %v533_v42 = vpop.f32.mrb[3].mxu1 }
 0x21f   :  { %v309_v43 = vmax.f32 %v303_v38, %v308_v41 }
 0x221   :  { %v327_v44 = vpack.c.bf16 %v309_v43, %v309_v43 }
 0x223   :  { %551 = vmatmul.mubr.bf16.vlgmr.msra.gmra.mrb[4].mxu0 %v327_v44 }
 0x2f6   :  { %v416_v46 = vpop.f32.mrb[4].mxu0 }
 0x2f7   :  { %v417_v47 = vadd.f32 %v458_v45, %v416_v46  ;;  %v552_v48 = vpop.f32.mrb[5].mxu0 }
 0x2f8   :  { %v419_v49 = vpop.f32.mrb[6].mxu0 }
 0x2f9   :  { %422 = vst [vmem:[#allocation10] sm:$0xff] %v417_v47  ;;  %v553_v50 = vpop.f32.mrb[7].mxu0 }
 0x2fa   :  { %686 = shalt.err (!%p683_p8)
}
 0x2fb   :  { %s687_s6 = scalar_lea.hbm %s869_s7, 128 }
 0x2fc   :  { %p688_p9 = scmp.ne.s32.totalorder %s869_s7, %s687_s6  ;;  %p691_p10 = scmp.lt.u32.totalorder %s687_s6, %s869_s7 }
 0x2fe   :  { %p693_p11 = pnand %p691_p10, %p688_p9 }
 0x300   :  { %696 = shalt.err (!%p693_p11)
}
 0x301   :  { %432 = dma.vmem_to_hbm [thread:$0]  %s430_s29, 128, %s869_s7, [#allocation4]  }
 0x302   :  { %703 = dma.done.wait [#allocation4], 128  }
 0x303   :  { %704 = vsyncadd [#allocation4], 4294967168 }
 0x304   :  { %436 = vsyncpa [#allocation3], 1 }
 0x305   :  { %437 = vsyncpa [#allocation6], 1 }
 0x306   :  { %438 = vsyncpa [#allocation9], 1 }
 0x307   :  { %439 = vsyncpa [#allocation4], 1 }

</bundles_post_ra>
